<compile_context>
chip_gen: v5e
topology: v5e:2x2
jax: 0.10.0
libtpu: 0.0.40
codegen_flags: <defaults>
</compile_context>

<pallas_src>
import functools

import jax
import jax.numpy as jnp
from jax.experimental import pallas as pl
from jax.experimental.pallas import tpu as pltpu

EPS = 1e-5
NEG_SLOPE = 0.01  # nn.LeakyReLU default


def _leaky_relu(x):
    return jnp.where(x > 0, x, NEG_SLOPE * x)


def _round_up(n, m):
    return ((n + m - 1) // m) * m


# ---------------------------------------------------------------------------
# Pallas kernel: one batch tile, all layers fused, events fused.
# Ref order: x, sW1, sb1, sWr, sbr, eW1x, eW1s, eb1, [eWh, ebh], eWf, ebf, out
# ---------------------------------------------------------------------------
def _fused_kernel(*refs, n_shared_hidden, n_indiv_hidden):
    has_mid = n_indiv_hidden > 1
    (x_ref, sW1_ref, sb1_ref, sWr_ref, sbr_ref,
     eW1x_ref, eW1s_ref, eb1_ref) = refs[:8]
    pos = 8
    if has_mid:
        eWh_ref, ebh_ref = refs[pos], refs[pos + 1]
        pos += 2
    eWf_ref, ebf_ref, out_ref = refs[pos], refs[pos + 1], refs[pos + 2]

    x = x_ref[...]                                            # (TB, in)

    # ---- shared MLP (BN already folded into following Linear weights) ----
    h = jnp.dot(x, sW1_ref[...], preferred_element_type=jnp.float32) + sb1_ref[...]
    h = _leaky_relu(h)
    for l in range(n_shared_hidden - 1):                      # hidden layers 2..n
        h = jnp.dot(h, sWr_ref[l], preferred_element_type=jnp.float32) + sbr_ref[l]
        h = _leaky_relu(h)
    shared = (jnp.dot(h, sWr_ref[n_shared_hidden - 1],        # final shared Linear
                      preferred_element_type=jnp.float32)
              + sbr_ref[n_shared_hidden - 1])                 # (TB, S)

    # ---- event nets, fused across events ----
    # Split matmul instead of concat([x, shared]) along lanes.
    g = (jnp.dot(x, eW1x_ref[...], preferred_element_type=jnp.float32)
         + jnp.dot(shared, eW1s_ref[...], preferred_element_type=jnp.float32)
         + eb1_ref[...])                                      # (TB, E*H)
    g = _leaky_relu(g)
    if has_mid:
        for l in range(n_indiv_hidden - 1):                   # block-diagonal mids
            g = (jnp.dot(g, eWh_ref[l], preferred_element_type=jnp.float32)
                 + ebh_ref[l])
            g = _leaky_relu(g)
    out = (jnp.dot(g, eWf_ref[...], preferred_element_type=jnp.float32)
           + ebf_ref[...])                                    # (TB, E*out), lane-dense
    out_ref[...] = out.astype(out_ref.dtype)


# ---------------------------------------------------------------------------
# Host-side BN folding and parameter packing.
# ---------------------------------------------------------------------------
def _fold_bn_into_linears(params, n_hidden):
    """Fold each block's BatchNorm (inference) into the NEXT Linear layer.

    Input layout per hidden layer: (W, b, gamma, beta, running_mean,
    running_var); final layer: (W, b). Weights are (in, out). Returns a list
    of (W, b) of length n_hidden + 1 (all f32, folded).
    """
    layers = []
    scale = None   # (1, d) affine of previous block's BN
    shift = None
    idx = 0
    for _ in range(n_hidden):
        W, b, g, beta, rm, rv = params[idx:idx + 6]
        idx += 6
        if scale is not None:
            b = b + shift @ W
            W = scale.T * W            # diag(scale) @ W
        layers.append((W, b))
        s = g / jnp.sqrt(rv + EPS)
        scale, shift = s, beta - rm * s
    W, b = params[idx], params[idx + 1]
    if scale is not None:
        b = b + shift @ W
        W = scale.T * W
    layers.append((W, b))
    return layers


@functools.partial(jax.jit, static_argnames=(
    "n_shared_hidden", "n_indiv_hidden", "num_events", "out_features"))
def cause_specific_net_forward(x, shared_params, event_params, *,
                               n_shared_hidden, n_indiv_hidden,
                               num_events, out_features):
    """Fold BN, pack/fuse params, and run the fused Pallas kernel."""
    assert n_shared_hidden >= 1 and n_indiv_hidden >= 1
    B, in_f = x.shape
    E, O = num_events, out_features
    has_mid = n_indiv_hidden > 1

    # ---- BN folding (f32, traced under jit) ----
    shared_layers = _fold_bn_into_linears(shared_params, n_shared_hidden)
    event_layers = [_fold_bn_into_linears(ep, n_indiv_hidden)
                    for ep in event_params]

    S = shared_layers[0][0].shape[1]            # shared_intermediate_size
    H = event_layers[0][0][0].shape[1]          # indiv_intermediate_size
    EH, EO = E * H, E * O

    # ---- pack shared MLP: first layer separate, rest stacked (all (S,S)) ----
    sW1, sb1 = shared_layers[0]                                   # (in,S),(1,S)
    sWr = jnp.stack([W for W, _ in shared_layers[1:]])            # (n_sh,S,S)
    sbr = jnp.stack([b for _, b in shared_layers[1:]])            # (n_sh,1,S)

    # ---- fuse event MLPs across events ----
    eW1x = jnp.concatenate([lay[0][0][:in_f] for lay in event_layers], axis=1)  # (in, E*H)
    eW1s = jnp.concatenate([lay[0][0][in_f:] for lay in event_layers], axis=1)  # (S, E*H)
    eb1 = jnp.concatenate([lay[0][1] for lay in event_layers], axis=1)          # (1, E*H)

    mid_args, mid_specs = [], []
    mid_bytes = 0
    if has_mid:
        # TODO(synk): block-diagonal fusion trades E^2/E extra FLOPs for a
        # single wide MXU op; fine for the typical 1-4 competing risks, switch
        # to a per-event batched einsum if num_events gets large.
        eWh = jnp.stack([
            jax.scipy.linalg.block_diag(*[event_layers[e][l][0] for e in range(E)])
            for l in range(1, n_indiv_hidden)])                   # (n_ind-1, EH, EH)
        ebh = jnp.stack([
            jnp.concatenate([event_layers[e][l][1] for e in range(E)], axis=1)
            for l in range(1, n_indiv_hidden)])                   # (n_ind-1, 1, EH)
        n_mid = n_indiv_hidden - 1
        mid_args = [eWh, ebh]
        mid_specs = [pl.BlockSpec((n_mid, EH, EH), lambda i: (0, 0, 0)),
                     pl.BlockSpec((n_mid, 1, EH), lambda i: (0, 0, 0))]
        mid_bytes = 4 * (eWh.size + ebh.size)

    eWf = jax.scipy.linalg.block_diag(
        *[event_layers[e][-1][0] for e in range(E)])              # (EH, E*O)
    ebf = jnp.concatenate([event_layers[e][-1][1] for e in range(E)], axis=1)   # (1, E*O)

    # ---- batch tile: big tiles amortize per-step overhead, VMEM-bounded ----
    weight_bytes = (4 * (sW1.size + sb1.size + sWr.size + sbr.size
                         + eW1x.size + eW1s.size + eb1.size
                         + eWf.size + ebf.size) + mid_bytes)
    # rough per-row VMEM: double-buffered x/out tiles + live f32 activations
    act_bytes_per_row = 4 * (2 * in_f + 2 * EO + 3 * max(S, EH))
    VMEM_BUDGET = 48 * 1024 * 1024            # conservative across v5e/v6e/v7x
    TB = min(512, _round_up(B, 8))
    while TB > 8 and weight_bytes + TB * act_bytes_per_row > VMEM_BUDGET:
        TB //= 2
    TB = max(8, _round_up(TB, 8))
    B_pad = _round_up(B, TB)
    if B_pad != B:
        x = jnp.pad(x, ((0, B_pad - B), (0, 0)))
    grid = (B_pad // TB,)

    kernel = functools.partial(_fused_kernel,
                               n_shared_hidden=n_shared_hidden,
                               n_indiv_hidden=n_indiv_hidden)

    in_specs = ([
        pl.BlockSpec((TB, in_f), lambda i: (i, 0)),               # x
        pl.BlockSpec((in_f, S), lambda i: (0, 0)),                # shared W1
        pl.BlockSpec((1, S), lambda i: (0, 0)),                   # shared b1
        pl.BlockSpec((n_shared_hidden, S, S), lambda i: (0, 0, 0)),   # shared rest W
        pl.BlockSpec((n_shared_hidden, 1, S), lambda i: (0, 0, 0)),   # shared rest b
        pl.BlockSpec((in_f, EH), lambda i: (0, 0)),               # event W1 (x part)
        pl.BlockSpec((S, EH), lambda i: (0, 0)),                  # event W1 (shared part)
        pl.BlockSpec((1, EH), lambda i: (0, 0)),                  # event b1
    ] + mid_specs + [
        pl.BlockSpec((EH, EO), lambda i: (0, 0)),                 # event final W (blockdiag)
        pl.BlockSpec((1, EO), lambda i: (0, 0)),                  # event final b
    ])
    out_specs = pl.BlockSpec((TB, EO), lambda i: (i, 0))

    args = [x, sW1, sb1, sWr, sbr, eW1x, eW1s, eb1] + mid_args + [eWf, ebf]

    flops = 2 * B_pad * (in_f * S + (n_shared_hidden - 1) * S * S + S * S
                         + in_f * EH + S * EH
                         + (n_indiv_hidden - 1) * EH * EH + EH * EO)
    bytes_accessed = 4 * (B_pad * in_f + B_pad * EO) + weight_bytes

    # TODO(synk): on v6e/v7x, casting resident weights to bf16 (f32 accumulate)
    # would halve weight bytes; kept f32 to hold strict tolerance vs. the f32
    # reference.
    out_flat = pl.pallas_call(
        kernel,
        grid=grid,
        in_specs=in_specs,
        out_specs=out_specs,
        out_shape=jax.ShapeDtypeStruct((B_pad, EO), jnp.float32),
        compiler_params=pltpu.CompilerParams(
            dimension_semantics=("parallel",),
            vmem_limit_bytes=64 * 1024 * 1024),
        cost_estimate=pl.CostEstimate(flops=flops, transcendentals=0,
                                      bytes_accessed=bytes_accessed),
    )(*args)

    return out_flat[:B].reshape(B, E, O)


# ---------------------------------------------------------------------------
# Deterministic parameter construction (synthetic, no checkpoint loading).
# ---------------------------------------------------------------------------
def init_mlp_params(key, in_features, hidden, n_hidden, out_features):
    params = []
    dims = [in_features] + [hidden] * n_hidden
    for i in range(n_hidden):
        key, kw, kb, kg, kbe, krm, krv = jax.random.split(key, 7)
        d_in, d_out = dims[i], dims[i + 1]
        W = jax.random.normal(kw, (d_in, d_out), jnp.float32) / jnp.sqrt(d_in)
        b = 0.01 * jax.random.normal(kb, (1, d_out), jnp.float32)
        gamma = 1.0 + 0.1 * jax.random.normal(kg, (1, d_out), jnp.float32)
        beta = 0.1 * jax.random.normal(kbe, (1, d_out), jnp.float32)
        rmean = 0.05 * jax.random.normal(krm, (1, d_out), jnp.float32)
        rvar = 1.0 + 0.1 * jnp.abs(jax.random.normal(krv, (1, d_out),
                                                     jnp.float32))
        params += [W, b, gamma, beta, rmean, rvar]
    key, kw, kb = jax.random.split(key, 3)
    W = jax.random.normal(kw, (dims[-1], out_features),
                          jnp.float32) / jnp.sqrt(dims[-1])
    b = 0.01 * jax.random.normal(kb, (1, out_features), jnp.float32)
    params += [W, b]
    return key, params


# Pure-JAX reference (unfolded: explicit BN), for correctness check.
def _mlp_ref(h, params, n_hidden):
    idx = 0
    for _ in range(n_hidden):
        W, b, g, beta, rm, rv = params[idx:idx + 6]
        idx += 6
        h = h @ W + b
        h = jnp.where(h > 0, h, NEG_SLOPE * h)
        h = (h - rm) * (g / jnp.sqrt(rv + EPS)) + beta
    W, b = params[idx], params[idx + 1]
    return h @ W + b


def reference_forward(x, shared_params, event_params,
                      n_shared_hidden, n_indiv_hidden):
    shared = _mlp_ref(x, shared_params, n_shared_hidden)
    combined = jnp.concatenate([x, shared], axis=1)
    outs = [_mlp_ref(combined, ep, n_indiv_hidden) for ep in event_params]
    return jnp.stack(outs, axis=1)


def _run_case(key, *, batch, in_features, shared_size, shared_layers,
              indiv_size, indiv_layers, out_features, num_events):
    key, kx = jax.random.split(key)
    x = jax.random.normal(kx, (batch, in_features), jnp.float32)

    key, shared_params = init_mlp_params(
        key, in_features, shared_size, shared_layers, shared_size)

    event_params = []
    for _ in range(num_events):
        key, ep = init_mlp_params(
            key, in_features + shared_size, indiv_size, indiv_layers,
            out_features)
        event_params.append(ep)

    out = cause_specific_net_forward(
        x, shared_params, event_params,
        n_shared_hidden=shared_layers,
        n_indiv_hidden=indiv_layers,
        num_events=num_events,
        out_features=out_features)
    out = jax.block_until_ready(out)

    ref = reference_forward(x, shared_params, event_params,
                            shared_layers, indiv_layers)

    assert out.shape == (batch, num_events, out_features), out.shape
    err = float(jnp.max(jnp.abs(out - ref)))
    assert jnp.allclose(out, ref, atol=1e-3, rtol=1e-3), err
    return key


if __name__ == "__main__":
    key = jax.random.PRNGKey(0)

    # Case 1: small config consistent with the torch module's __init__.
    key = _run_case(key, batch=8, in_features=16,
                    shared_size=32, shared_layers=2,
                    indiv_size=32, indiv_layers=2,
                    out_features=8, num_events=2)

    # Case 2: num_events == 1 / single hidden layer / padded-batch path.
    key = _run_case(key, batch=4, in_features=16,
                    shared_size=32, shared_layers=1,
                    indiv_size=32, indiv_layers=1,
                    out_features=8, num_events=1)

    print("KERNEL_OK")
</pallas_src>

<mosaic_0001>
module attributes {stable_mosaic.version = 11 : i64} {
  func.func @_fused_kernel(%arg0: i32, %arg1: memref<8x16xf32, #tpu.memory_space<vmem>>, %arg2: memref<16x32xf32, #tpu.memory_space<vmem>>, %arg3: memref<1x32xf32, #tpu.memory_space<vmem>>, %arg4: memref<2x32x32xf32, #tpu.memory_space<vmem>>, %arg5: memref<2x1x32xf32, #tpu.memory_space<vmem>>, %arg6: memref<16x64xf32, #tpu.memory_space<vmem>>, %arg7: memref<32x64xf32, #tpu.memory_space<vmem>>, %arg8: memref<1x64xf32, #tpu.memory_space<vmem>>, %arg9: memref<1x64x64xf32, #tpu.memory_space<vmem>>, %arg10: memref<1x1x64xf32, #tpu.memory_space<vmem>>, %arg11: memref<64x16xf32, #tpu.memory_space<vmem>>, %arg12: memref<1x16xf32, #tpu.memory_space<vmem>>, %arg13: memref<8x16xf32, #tpu.memory_space<vmem>>) attributes {dimension_semantics = [#tpu.dimension_semantics<parallel>], iteration_bounds = array<i64: 1>, scalar_prefetch = 0 : i64, scratch_operands = 0 : i64, tpu.core_type = #tpu.core_type<tc>, window_params = [{transform_indices = @transform_0, window_bounds = array<i64: 8, 16>}, {pipeline_mode = #tpu.pipeline_mode<synchronous>, transform_indices = @transform_1, window_bounds = array<i64: 16, 32>}, {pipeline_mode = #tpu.pipeline_mode<synchronous>, transform_indices = @transform_2, window_bounds = array<i64: 1, 32>}, {pipeline_mode = #tpu.pipeline_mode<synchronous>, transform_indices = @transform_3, window_bounds = array<i64: 2, 32, 32>}, {pipeline_mode = #tpu.pipeline_mode<synchronous>, transform_indices = @transform_4, window_bounds = array<i64: 2, 1, 32>}, {pipeline_mode = #tpu.pipeline_mode<synchronous>, transform_indices = @transform_5, window_bounds = array<i64: 16, 64>}, {pipeline_mode = #tpu.pipeline_mode<synchronous>, transform_indices = @transform_6, window_bounds = array<i64: 32, 64>}, {pipeline_mode = #tpu.pipeline_mode<synchronous>, transform_indices = @transform_7, window_bounds = array<i64: 1, 64>}, {pipeline_mode = #tpu.pipeline_mode<synchronous>, transform_indices = @transform_8, window_bounds = array<i64: 1, 64, 64>}, {pipeline_mode = #tpu.pipeline_mode<synchronous>, transform_indices = @transform_9, window_bounds = array<i64: 1, 1, 64>}, {pipeline_mode = #tpu.pipeline_mode<synchronous>, transform_indices = @transform_10, window_bounds = array<i64: 64, 16>}, {pipeline_mode = #tpu.pipeline_mode<synchronous>, transform_indices = @transform_11, window_bounds = array<i64: 1, 16>}, {transform_indices = @transform_12, window_bounds = array<i64: 8, 16>}]} {
    %c0 = arith.constant 0 : index
    %c0_0 = arith.constant 0 : index
    %0 = vector.load %arg1[%c0, %c0_0] : memref<8x16xf32, #tpu.memory_space<vmem>>, vector<8x16xf32>
    %c0_1 = arith.constant 0 : index
    %c0_2 = arith.constant 0 : index
    %1 = vector.load %arg2[%c0_1, %c0_2] : memref<16x32xf32, #tpu.memory_space<vmem>>, vector<16x32xf32>
    %cst = arith.constant dense<0.000000e+00> : vector<8x32xf32>
    %2 = tpu.matmul %0, %1, %cst {dimension_numbers = #tpu.dot_dimension_numbers<[1], [0], [0], [1], [0, 0, 1, 1], [], []>} : vector<8x16xf32>, vector<16x32xf32>, vector<8x32xf32> -> vector<8x32xf32>
    %c0_3 = arith.constant 0 : index
    %c0_4 = arith.constant 0 : index
    %3 = vector.load %arg3[%c0_3, %c0_4] : memref<1x32xf32, #tpu.memory_space<vmem>>, vector<1x32xf32>
    %4 = vector.broadcast %3 : vector<1x32xf32> to vector<8x32xf32>
    %5 = arith.addf %2, %4 : vector<8x32xf32>
    %cst_5 = arith.constant 0.000000e+00 : f32
    %6 = vector.broadcast %cst_5 : f32 to vector<8x32xf32>
    %7 = arith.cmpf ogt, %5, %6 : vector<8x32xf32>
    %cst_6 = arith.constant 0.00999999977 : f32
    %8 = vector.broadcast %cst_6 : f32 to vector<8x32xf32>
    %9 = arith.mulf %8, %5 : vector<8x32xf32>
    %10 = arith.select %7, %5, %9 : vector<8x32xi1>, vector<8x32xf32>
    %c0_7 = arith.constant 0 : index
    %c0_8 = arith.constant 0 : index
    %c0_9 = arith.constant 0 : index
    %11 = vector.load %arg4[%c0_7, %c0_8, %c0_9] : memref<2x32x32xf32, #tpu.memory_space<vmem>>, vector<1x32x32xf32>
    %12 = vector.shape_cast %11 : vector<1x32x32xf32> to vector<32x32xf32>
    %cst_10 = arith.constant dense<0.000000e+00> : vector<8x32xf32>
    %13 = tpu.matmul %10, %12, %cst_10 {dimension_numbers = #tpu.dot_dimension_numbers<[1], [0], [0], [1], [0, 0, 1, 1], [], []>} : vector<8x32xf32>, vector<32x32xf32>, vector<8x32xf32> -> vector<8x32xf32>
    %c0_11 = arith.constant 0 : index
    %c0_12 = arith.constant 0 : index
    %c0_13 = arith.constant 0 : index
    %14 = vector.load %arg5[%c0_11, %c0_12, %c0_13] : memref<2x1x32xf32, #tpu.memory_space<vmem>>, vector<1x1x32xf32>
    %15 = vector.shape_cast %14 : vector<1x1x32xf32> to vector<1x32xf32>
    %16 = vector.broadcast %15 : vector<1x32xf32> to vector<8x32xf32>
    %17 = arith.addf %13, %16 : vector<8x32xf32>
    %cst_14 = arith.constant 0.000000e+00 : f32
    %18 = vector.broadcast %cst_14 : f32 to vector<8x32xf32>
    %19 = arith.cmpf ogt, %17, %18 : vector<8x32xf32>
    %cst_15 = arith.constant 0.00999999977 : f32
    %20 = vector.broadcast %cst_15 : f32 to vector<8x32xf32>
    %21 = arith.mulf %20, %17 : vector<8x32xf32>
    %22 = arith.select %19, %17, %21 : vector<8x32xi1>, vector<8x32xf32>
    %c1 = arith.constant 1 : index
    %c0_16 = arith.constant 0 : index
    %c0_17 = arith.constant 0 : index
    %23 = vector.load %arg4[%c1, %c0_16, %c0_17] : memref<2x32x32xf32, #tpu.memory_space<vmem>>, vector<1x32x32xf32>
    %24 = vector.shape_cast %23 : vector<1x32x32xf32> to vector<32x32xf32>
    %cst_18 = arith.constant dense<0.000000e+00> : vector<8x32xf32>
    %25 = tpu.matmul %22, %24, %cst_18 {dimension_numbers = #tpu.dot_dimension_numbers<[1], [0], [0], [1], [0, 0, 1, 1], [], []>} : vector<8x32xf32>, vector<32x32xf32>, vector<8x32xf32> -> vector<8x32xf32>
    %c1_19 = arith.constant 1 : index
    %c0_20 = arith.constant 0 : index
    %c0_21 = arith.constant 0 : index
    %26 = vector.load %arg5[%c1_19, %c0_20, %c0_21] : memref<2x1x32xf32, #tpu.memory_space<vmem>>, vector<1x1x32xf32>
    %27 = vector.shape_cast %26 : vector<1x1x32xf32> to vector<1x32xf32>
    %28 = vector.broadcast %27 : vector<1x32xf32> to vector<8x32xf32>
    %29 = arith.addf %25, %28 : vector<8x32xf32>
    %c0_22 = arith.constant 0 : index
    %c0_23 = arith.constant 0 : index
    %30 = vector.load %arg6[%c0_22, %c0_23] : memref<16x64xf32, #tpu.memory_space<vmem>>, vector<16x64xf32>
    %cst_24 = arith.constant dense<0.000000e+00> : vector<8x64xf32>
    %31 = tpu.matmul %0, %30, %cst_24 {dimension_numbers = #tpu.dot_dimension_numbers<[1], [0], [0], [1], [0, 0, 1, 1], [], []>} : vector<8x16xf32>, vector<16x64xf32>, vector<8x64xf32> -> vector<8x64xf32>
    %c0_25 = arith.constant 0 : index
    %c0_26 = arith.constant 0 : index
    %32 = vector.load %arg7[%c0_25, %c0_26] : memref<32x64xf32, #tpu.memory_space<vmem>>, vector<32x64xf32>
    %cst_27 = arith.constant dense<0.000000e+00> : vector<8x64xf32>
    %33 = tpu.matmul %29, %32, %cst_27 {dimension_numbers = #tpu.dot_dimension_numbers<[1], [0], [0], [1], [0, 0, 1, 1], [], []>} : vector<8x32xf32>, vector<32x64xf32>, vector<8x64xf32> -> vector<8x64xf32>
    %34 = arith.addf %31, %33 : vector<8x64xf32>
    %c0_28 = arith.constant 0 : index
    %c0_29 = arith.constant 0 : index
    %35 = vector.load %arg8[%c0_28, %c0_29] : memref<1x64xf32, #tpu.memory_space<vmem>>, vector<1x64xf32>
    %36 = vector.broadcast %35 : vector<1x64xf32> to vector<8x64xf32>
    %37 = arith.addf %34, %36 : vector<8x64xf32>
    %cst_30 = arith.constant 0.000000e+00 : f32
    %38 = vector.broadcast %cst_30 : f32 to vector<8x64xf32>
    %39 = arith.cmpf ogt, %37, %38 : vector<8x64xf32>
    %cst_31 = arith.constant 0.00999999977 : f32
    %40 = vector.broadcast %cst_31 : f32 to vector<8x64xf32>
    %41 = arith.mulf %40, %37 : vector<8x64xf32>
    %42 = arith.select %39, %37, %41 : vector<8x64xi1>, vector<8x64xf32>
    %c0_32 = arith.constant 0 : index
    %c0_33 = arith.constant 0 : index
    %c0_34 = arith.constant 0 : index
    %43 = vector.load %arg9[%c0_32, %c0_33, %c0_34] : memref<1x64x64xf32, #tpu.memory_space<vmem>>, vector<1x64x64xf32>
    %44 = vector.shape_cast %43 : vector<1x64x64xf32> to vector<64x64xf32>
    %cst_35 = arith.constant dense<0.000000e+00> : vector<8x64xf32>
    %45 = tpu.matmul %42, %44, %cst_35 {dimension_numbers = #tpu.dot_dimension_numbers<[1], [0], [0], [1], [0, 0, 1, 1], [], []>} : vector<8x64xf32>, vector<64x64xf32>, vector<8x64xf32> -> vector<8x64xf32>
    %c0_36 = arith.constant 0 : index
    %c0_37 = arith.constant 0 : index
    %c0_38 = arith.constant 0 : index
    %46 = vector.load %arg10[%c0_36, %c0_37, %c0_38] : memref<1x1x64xf32, #tpu.memory_space<vmem>>, vector<1x1x64xf32>
    %47 = vector.shape_cast %46 : vector<1x1x64xf32> to vector<1x64xf32>
    %48 = vector.broadcast %47 : vector<1x64xf32> to vector<8x64xf32>
    %49 = arith.addf %45, %48 : vector<8x64xf32>
    %cst_39 = arith.constant 0.000000e+00 : f32
    %50 = vector.broadcast %cst_39 : f32 to vector<8x64xf32>
    %51 = arith.cmpf ogt, %49, %50 : vector<8x64xf32>
    %cst_40 = arith.constant 0.00999999977 : f32
    %52 = vector.broadcast %cst_40 : f32 to vector<8x64xf32>
    %53 = arith.mulf %52, %49 : vector<8x64xf32>
    %54 = arith.select %51, %49, %53 : vector<8x64xi1>, vector<8x64xf32>
    %c0_41 = arith.constant 0 : index
    %c0_42 = arith.constant 0 : index
    %55 = vector.load %arg11[%c0_41, %c0_42] : memref<64x16xf32, #tpu.memory_space<vmem>>, vector<64x16xf32>
    %cst_43 = arith.constant dense<0.000000e+00> : vector<8x16xf32>
    %56 = tpu.matmul %54, %55, %cst_43 {dimension_numbers = #tpu.dot_dimension_numbers<[1], [0], [0], [1], [0, 0, 1, 1], [], []>} : vector<8x64xf32>, vector<64x16xf32>, vector<8x16xf32> -> vector<8x16xf32>
    %c0_44 = arith.constant 0 : index
    %c0_45 = arith.constant 0 : index
    %57 = vector.load %arg12[%c0_44, %c0_45] : memref<1x16xf32, #tpu.memory_space<vmem>>, vector<1x16xf32>
    %58 = vector.broadcast %57 : vector<1x16xf32> to vector<8x16xf32>
    %59 = arith.addf %56, %58 : vector<8x16xf32>
    %c0_46 = arith.constant 0 : index
    %c0_47 = arith.constant 0 : index
    %60 = vector.load %arg13[%c0_46, %c0_47] : memref<8x16xf32, #tpu.memory_space<vmem>>, vector<8x16xf32>
    tpu.vector_store %arg13[%c0_46, %c0_47], %59 {strides = array<i32>} : memref<8x16xf32, #tpu.memory_space<vmem>>, vector<8x16xf32>,
    return
  }
  func.func @transform_0(%arg0: i32) -> (i32, i32) {
    %c0_i32 = arith.constant 0 : i32
    %c0_i32_0 = arith.constant 0 : i32
    return %arg0, %c0_i32 : i32, i32
  }
  func.func @transform_1(%arg0: i32) -> (i32, i32) {
    %c0_i32 = arith.constant 0 : i32
    %c0_i32_0 = arith.constant 0 : i32
    %c0_i32_1 = arith.constant 0 : i32
    return %c0_i32, %c0_i32_0 : i32, i32
  }
  func.func @transform_2(%arg0: i32) -> (i32, i32) {
    %c0_i32 = arith.constant 0 : i32
    %c0_i32_0 = arith.constant 0 : i32
    %c0_i32_1 = arith.constant 0 : i32
    return %c0_i32, %c0_i32_0 : i32, i32
  }
  func.func @transform_3(%arg0: i32) -> (i32, i32, i32) {
    %c0_i32 = arith.constant 0 : i32
    %c0_i32_0 = arith.constant 0 : i32
    %c0_i32_1 = arith.constant 0 : i32
    %c0_i32_2 = arith.constant 0 : i32
    return %c0_i32, %c0_i32_0, %c0_i32_1 : i32, i32, i32
  }
  func.func @transform_4(%arg0: i32) -> (i32, i32, i32) {
    %c0_i32 = arith.constant 0 : i32
    %c0_i32_0 = arith.constant 0 : i32
    %c0_i32_1 = arith.constant 0 : i32
    %c0_i32_2 = arith.constant 0 : i32
    return %c0_i32, %c0_i32_0, %c0_i32_1 : i32, i32, i32
  }
  func.func @transform_5(%arg0: i32) -> (i32, i32) {
    %c0_i32 = arith.constant 0 : i32
    %c0_i32_0 = arith.constant 0 : i32
    %c0_i32_1 = arith.constant 0 : i32
    return %c0_i32, %c0_i32_0 : i32, i32
  }
  func.func @transform_6(%arg0: i32) -> (i32, i32) {
    %c0_i32 = arith.constant 0 : i32
    %c0_i32_0 = arith.constant 0 : i32
    %c0_i32_1 = arith.constant 0 : i32
    return %c0_i32, %c0_i32_0 : i32, i32
  }
  func.func @transform_7(%arg0: i32) -> (i32, i32) {
    %c0_i32 = arith.constant 0 : i32
    %c0_i32_0 = arith.constant 0 : i32
    %c0_i32_1 = arith.constant 0 : i32
    return %c0_i32, %c0_i32_0 : i32, i32
  }
  func.func @transform_8(%arg0: i32) -> (i32, i32, i32) {
    %c0_i32 = arith.constant 0 : i32
    %c0_i32_0 = arith.constant 0 : i32
    %c0_i32_1 = arith.constant 0 : i32
    %c0_i32_2 = arith.constant 0 : i32
    return %c0_i32, %c0_i32_0, %c0_i32_1 : i32, i32, i32
  }
  func.func @transform_9(%arg0: i32) -> (i32, i32, i32) {
    %c0_i32 = arith.constant 0 : i32
    %c0_i32_0 = arith.constant 0 : i32
    %c0_i32_1 = arith.constant 0 : i32
    %c0_i32_2 = arith.constant 0 : i32
    return %c0_i32, %c0_i32_0, %c0_i32_1 : i32, i32, i32
  }
  func.func @transform_10(%arg0: i32) -> (i32, i32) {
    %c0_i32 = arith.constant 0 : i32
    %c0_i32_0 = arith.constant 0 : i32
    %c0_i32_1 = arith.constant 0 : i32
    return %c0_i32, %c0_i32_0 : i32, i32
  }
  func.func @transform_11(%arg0: i32) -> (i32, i32) {
    %c0_i32 = arith.constant 0 : i32
    %c0_i32_0 = arith.constant 0 : i32
    %c0_i32_1 = arith.constant 0 : i32
    return %c0_i32, %c0_i32_0 : i32, i32
  }
  func.func @transform_12(%arg0: i32) -> (i32, i32) {
    %c0_i32 = arith.constant 0 : i32
    %c0_i32_0 = arith.constant 0 : i32
    return %arg0, %c0_i32 : i32, i32
  }
}

</mosaic_0001>

<bundles_post_ra>
// kernel: cause_specific_net_forward.1
= control target key start
LH: loop header
LB: loop body
LE: loop exit
PB: predicated region body
PF: predicated region fallthrough
CT: control target
= control target key end

     0   :  { %vm48_vm0 = vcmask 130048   ;;  %vm83_vm2 = vcmask 261120   ;;  %vm212_vm5 = vcmask 523264   ;;  %s490_s1 = inlined_call_operand.vmem [shape: f32[16,32], index: 1, kind: input, shape index: {}]   ;;  %s491_s0 = inlined_call_operand.vmem [shape: f32[8,16], index: 0, kind: input, shape index: {}]   ;;  %s492_s3 = inlined_call_operand.vmem [shape: f32[2,32,32], index: 3, kind: input, shape index: {}]   ;;  %s493_s2 = inlined_call_operand.vmem [shape: f32[1,32], index: 2, kind: input, shape index: {}]   ;;  %s494_s4 = inlined_call_operand.vmem [shape: f32[2,1,32], index: 4, kind: input, shape index: {}]   ;;  %s495_s6 = inlined_call_operand.vmem [shape: f32[32,64], index: 6, kind: input, shape index: {}]   ;;  %s496_s5 = inlined_call_operand.vmem [shape: f32[16,64], index: 5, kind: input, shape index: {}]   ;;  %s497_s8 = inlined_call_operand.vmem [shape: f32[1,64,64], index: 8, kind: input, shape index: {}]   ;;  %s498_s7 = inlined_call_operand.vmem [shape: f32[1,64], index: 7, kind: input, shape index: {}]   ;;  %s499_s9 = inlined_call_operand.vmem [shape: f32[1,1,64], index: 9, kind: input, shape index: {}]   ;;  %s500_s10 = inlined_call_operand.vmem [shape: f32[64,16], index: 10, kind: input, shape index: {}]   ;;  %s501_s11 = inlined_call_operand.vmem [shape: f32[1,16], index: 11, kind: input, shape index: {}]   ;;  %s502_s12 = inlined_call_operand.vmem [shape: f32[8,16], index: 12, kind: output, shape index: {}]  }
   0x1   :  { %v43_v0 = vld [vmem:[%s490_s1 + $0x8] sm:$0xff]  ;;  %v42_v1 = vld [vmem:[%s490_s1] sm:$0xff]  ;;  %v78_v3 = vld [vmem:[%s492_s3 + $0x18] sm:$0xff] }
   0x2   :  { %66 = vmatpush.msra.mxu0 %v43_v0  ;;  %v41_v2 = vld [vmem:[%s491_s0] sm:$0xff]  ;;  %99 = vmatpush.msra.mxu3 %v78_v3  ;;  %v77_v4 = vld [vmem:[%s492_s3 + $0x10] sm:$0xff]  ;;  %v76_v5 = vld [vmem:[%s492_s3 + $0x8] sm:$0xff] }
   0x3   :  { %v75_v6 = vld [vmem:[%s492_s3] sm:$0xff]  ;;  %v284_v7 = vld [vmem:[%s492_s3 + $0x38] sm:$0xff]  ;;  %v283_v13 = vld [vmem:[%s492_s3 + $0x30] sm:$0xff] }
   0x4   :  { %67 = vmatpush.msra.mxu0 %v42_v1  ;;  %100 = vmatpush.msra.mxu3 %v77_v4  ;;  %v291_v8 = vld [vmem:[%s493_s2] ss:$0 sm:$0xff]  ;;  %v282_v14 = vld [vmem:[%s492_s3 + $0x28] sm:$0xff]  ;;  %v148_v16 = vld [vmem:[%s495_s6 + $0x18] sm:$0xff] }
   0x5   :  { %279 = vmatmul.msk.f32.vlgmr.msra.gmra.mxu0 %vm48_vm0, %v41_v2  ;;  %v281_v15 = vld [vmem:[%s492_s3 + $0x20] sm:$0xff]  ;;  %v147_v17 = vld [vmem:[%s495_s6 + $0x10] sm:$0xff]  ;;  %v146_v18 = vld [vmem:[%s495_s6 + $0x8] sm:$0xff] }
   0x6   :  { %101 = vmatpush.msra.mxu3 %v76_v5  ;;  %135 = vmatpush.msrb.mxu0 %v284_v7  ;;  %v292_v19 = vld [vmem:[%s494_s4] ss:$0 sm:$0xff]  ;;  %v144_v25 = vld [vmem:[%s496_s5 + $0x8] sm:$0xff]  ;;  %v207_v27 = vld [vmem:[%s497_s8 + $0x38] sm:$0xff] }
   0x7   :  { %v145_v24 = vld [vmem:[%s495_s6] sm:$0xff]  ;;  %v206_v28 = vld [vmem:[%s497_s8 + $0x30] sm:$0xff]  ;;  %224 = vmatpush.msra.mxu1 %v207_v27  ;;  %v205_v29 = vld [vmem:[%s497_s8 + $0x28] sm:$0xff] }
   0x8   :  { %102 = vmatpush.msra.mxu3 %v75_v6  ;;  %136 = vmatpush.msrb.mxu0 %v283_v13  ;;  %v143_v26 = vld [vmem:[%s496_s5] sm:$0xff]  ;;  %v203_v34 = vld [vmem:[%s497_s8 + $0x18] sm:$0xff]  ;;  %v202_v35 = vld [vmem:[%s497_s8 + $0x10] sm:$0xff] }
   0x9   :  { %225 = vmatpush.msra.mxu1 %v206_v28  ;;  %v204_v30 = vld [vmem:[%s497_s8 + $0x20] sm:$0xff]  ;;  %v201_v36 = vld [vmem:[%s497_s8 + $0x8] sm:$0xff]  ;;  %v246_v38 = vld [vmem:[%s500_s10 + $0x38] sm:$0xff] }
   0xa   :  { %137 = vmatpush.msrb.mxu0 %v282_v14  ;;  %164 = vmatpush.msrb.mxu3 %v148_v16  ;;  %v293_v31 = vld [vmem:[%s494_s4 + $0x1] ss:$0 sm:$0xff]  ;;  %v245_v39 = vld [vmem:[%s500_s10 + $0x30] sm:$0xff]  ;;  %v244_v40 = vld [vmem:[%s500_s10 + $0x28] sm:$0xff] }
   0xb   :  { %226 = vmatpush.msra.mxu1 %v205_v29  ;;  %v200_v37 = vld [vmem:[%s497_s8] sm:$0xff]  ;;  %262 = vmatpush.msra.mxu2 %v246_v38  ;;  %v242_v42 = vld [vmem:[%s500_s10 + $0x18] sm:$0xff]  ;;  %v241_v50 = vld [vmem:[%s500_s10 + $0x10] sm:$0xff] }
   0xc   :  { %138 = vmatpush.msrb.mxu0 %v281_v15  ;;  %165 = vmatpush.msrb.mxu3 %v147_v17  ;;  %v243_v41 = vld [vmem:[%s500_s10 + $0x20] sm:$0xff]  ;;  %v240_v51 = vld [vmem:[%s500_s10 + $0x8] sm:$0xff] }
   0xd   :  { %227 = vmatpush.msra.mxu1 %v204_v30  ;;  %263 = vmatpush.msra.mxu2 %v245_v39  ;;  %v294_v44 = vld [vmem:[%s498_s7] ss:$0 sm:$0xff] }
   0xe   :  { %166 = vmatpush.msrb.mxu3 %v146_v18  ;;  %186 = vmatpush.msra.mxu0 %v144_v25  ;;  %v239_v52 = vld [vmem:[%s500_s10] sm:$0xff] }
   0xf   :  { %228 = vmatpush.msra.mxu1 %v203_v34  ;;  %264 = vmatpush.msra.mxu2 %v244_v40  ;;  %v295_v53 = vld [vmem:[%s499_s9] ss:$0 sm:$0xff] }
  0x10   :  { %167 = vmatpush.msrb.mxu3 %v145_v24  ;;  %187 = vmatpush.msra.mxu0 %v143_v26  ;;  %v296_v58 = vld [vmem:[%s501_s11] ss:$0 sm:$0xff] }
  0x11   :  { %229 = vmatpush.msra.mxu1 %v202_v35  ;;  %265 = vmatpush.msra.mxu2 %v243_v41 }
  0x13   :  { %230 = vmatpush.msra.mxu1 %v201_v36  ;;  %266 = vmatpush.msra.mxu2 %v242_v42 }
  0x15   :  { %231 = vmatpush.msra.mxu1 %v200_v37  ;;  %267 = vmatpush.msra.mxu2 %v241_v50 }
  0x17   :  { %268 = vmatpush.msra.mxu2 %v240_v51 }
  0x19   :  { %269 = vmatpush.msra.mxu2 %v239_v52 }
  0x82   :  { %v69_v9 = vpop.f32.mrf.mxu0 }
  0x83   :  { %v70_v10 = vadd.f32 %v291_v8, %v69_v9 }
  0x85   :  { %v73_v11 = vmul.f32 0.01, %v70_v10  ;;  %vm72_vm1 = vcmp.gt.f32.partialorder %v70_v10, 0.0 }
  0x87   :  { %v74_v12 = vsel %vm72_vm1, %v70_v10, %v73_v11 }
  0x88   :  { %280 = vmatmul.msk.f32.vlgmr.msra.gmra.mxu3 %vm83_vm2, %v74_v12 }
 0x10b   :  { %v104_v20 = vpop.f32.mrf.mxu3 }
 0x10c   :  { %v105_v21 = vadd.f32 %v292_v19, %v104_v20 }
 0x10e   :  { %vm107_vm3 = vcmp.gt.f32.partialorder %v105_v21, 0.0  ;;  %v108_v22 = vmul.f32 0.01, %v105_v21 }
 0x110   :  { %v109_v23 = vsel %vm107_vm3, %v105_v21, %v108_v22 }
 0x111   :  { %286 = vmatmul.msk.f32.vlgmr.msrb.gmra.mxu0 %vm83_vm2, %v109_v23 }
 0x119   :  { %288 = vmatmul.msk.f32.vlgmr.msra.gmra.mxu0 %vm48_vm0, %v41_v2 }
 0x18e   :  { %v140_v32 = vpop.f32.mrf.mxu0 }
 0x18f   :  { %v141_v33 = vadd.f32 %v293_v31, %v140_v32 }
 0x191   :  { %287 = vmatmul.msk.f32.vlgmr.msrb.gmra.mxu3 %vm83_vm2, %v141_v33 }
 0x196   :  { %v189_v43 = vpop.f32.mrf.mxu0 }
 0x214   :  { %v169_v45 = vpop.f32.mrf.mxu3 }
 0x215   :  { %v190_v46 = vadd.f32 %v189_v43, %v169_v45 }
 0x217   :  { %v196_v47 = vadd.f32 %v294_v44, %v190_v46 }
 0x219   :  { %vm197_vm4 = vcmp.gt.f32.partialorder %v196_v47, 0.0  ;;  %v198_v48 = vmul.f32 0.01, %v196_v47 }
 0x21b   :  { %v199_v49 = vsel %vm197_vm4, %v196_v47, %v198_v48 }
 0x21c   :  { %289 = vmatmul.msk.f32.vlgmr.msra.gmra.mxu1 %vm212_vm5, %v199_v49 }
 0x299   :  { %v233_v54 = vpop.f32.mrf.mxu1 }
 0x29a   :  { %v234_v55 = vadd.f32 %v295_v53, %v233_v54 }
 0x29c   :  { %v237_v56 = vmul.f32 0.01, %v234_v55  ;;  %vm236_vm6 = vcmp.gt.f32.partialorder %v234_v55, 0.0 }
 0x29e   :  { %v238_v57 = vsel %vm236_vm6, %v234_v55, %v237_v56 }
 0x29f   :  { %290 = vmatmul.msk.f32.vlgmr.msra.gmra.mxu2 %vm212_vm5, %v238_v57 }
 0x322   :  { %v271_v59 = vpop.f32.mrf.mxu2 }
 0x323   :  { %v272_v60 = vadd.f32 %v296_v58, %v271_v59 }
 0x325   :  { %274 = vst.msk [vmem:[%s502_s12] sm:$0xff] %vm48_vm0, %v272_v60 }

</bundles_post_ra>
